<compile_context>
chip_gen: v7x
topology: tpu7x:2x2x1
jax: 0.10.0
libtpu: 0.0.40
codegen_flags: <defaults>
</compile_context>

<pallas_src>
import functools

import jax
import jax.numpy as jnp
from jax.experimental import pallas as pl
from jax.experimental.pallas import tpu as pltpu


def actor_kernel(x_ref, w1_ref, b1_ref, w2_ref, b2_ref, w3_ref, b3_ref, out_ref):
    """Fused 3-layer MLP: relu(xW1+b1) -> relu(.W2+b2) -> tanh(.W3+b3).

    MXU operands (x / W refs) may be bf16; accumulation, bias adds, ReLU and
    tanh are all f32.
    """
    x = x_ref[...]
    h1 = jnp.dot(x, w1_ref[...], preferred_element_type=jnp.float32) + b1_ref[...]
    h1 = jnp.maximum(h1, 0.0)
    h2 = jnp.dot(h1.astype(w2_ref.dtype), w2_ref[...],
                 preferred_element_type=jnp.float32) + b2_ref[...]
    h2 = jnp.maximum(h2, 0.0)
    h3 = jnp.dot(h2.astype(w3_ref.dtype), w3_ref[...],
                 preferred_element_type=jnp.float32) + b3_ref[...]
    out_ref[...] = jnp.tanh(h3)


def _round_up(x, m):
    return ((x + m - 1) // m) * m


def _pad2(a, rows, cols):
    return jnp.pad(a, ((0, rows - a.shape[0]), (0, cols - a.shape[1])))


def _pad_bias(b, n):
    return jnp.pad(b.astype(jnp.float32), (0, n - b.shape[0])).reshape(1, n)


@functools.partial(jax.jit, static_argnames=("batch_tile", "compute_dtype"))
def actor_forward(state, params, *, batch_tile=256, compute_dtype=jnp.float32):
    """state: (B, input_size) f32.  params: dict of W1,b1,W2,b2,W3,b3."""
    w1, b1 = params["w1"], params["b1"]
    w2, b2 = params["w2"], params["b2"]
    w3, b3 = params["w3"], params["b3"]

    B, in_dim = state.shape
    hid = w1.shape[1]
    out_dim = w3.shape[1]

    # Lane-dense padding of every matmul operand / output.
    in_p = _round_up(in_dim, 128)
    hid_p = _round_up(hid, 128)
    out_p = _round_up(out_dim, 128)

    # Batch tile: fill the MXU M-dimension.  Second-to-last block dim must be
    # a multiple of 8 or equal the full batch.
    tb = min(batch_tile, B)
    if tb < B:
        tb = max(8, (tb // 8) * 8)
    grid = (pl.cdiv(B, tb),)

    cd = jnp.dtype(compute_dtype)
    x_p = jnp.pad(state.astype(cd), ((0, 0), (0, in_p - in_dim)))
    w1_p = _pad2(w1, in_p, hid_p).astype(cd)
    w2_p = _pad2(w2, hid_p, hid_p).astype(cd)
    w3_p = _pad2(w3, hid_p, out_p).astype(cd)
    b1_p = _pad_bias(b1, hid_p)   # biases stay f32 (f32 VPU math on all chips)
    b2_p = _pad_bias(b2, hid_p)
    b3_p = _pad_bias(b3, out_p)

    # Explicit VMEM budget (Pallas double-buffers each block by default).
    itemsize = cd.itemsize
    weight_bytes = (in_p * hid_p + hid_p * hid_p + hid_p * out_p) * itemsize
    bias_bytes = (2 * hid_p + out_p) * 4
    io_bytes = tb * in_p * itemsize + tb * out_p * 4
    vmem_needed = 2 * (weight_bytes + bias_bytes + io_bytes)
    vmem_limit = int(min(max(2 * vmem_needed, 16 << 20), 64 << 20))

    full = lambda r, c: pl.BlockSpec((r, c), lambda i: (0, 0))

    out = pl.pallas_call(
        actor_kernel,
        out_shape=jax.ShapeDtypeStruct((B, out_p), jnp.float32),
        grid_spec=pltpu.PrefetchScalarGridSpec(
            num_scalar_prefetch=0,
            grid=grid,
            in_specs=[
                pl.BlockSpec((tb, in_p), lambda i: (i, 0)),  # x tile over batch
                full(in_p, hid_p),                            # W1 (constant index -> resident)
                full(1, hid_p),                               # b1
                full(hid_p, hid_p),                           # W2
                full(1, hid_p),                               # b2
                full(hid_p, out_p),                           # W3
                full(1, out_p),                               # b3
            ],
            out_specs=pl.BlockSpec((tb, out_p), lambda i: (i, 0)),
        ),
        compiler_params=pltpu.CompilerParams(
            dimension_semantics=("parallel",),   # batch tiles shard across TCs on v7x
            vmem_limit_bytes=vmem_limit,
        ),
    )(x_p, w1_p, b1_p, w2_p, b2_p, w3_p, b3_p)

    return out[:, :out_dim]


def xavier_uniform(key, fan_in, fan_out):
    bound = jnp.sqrt(6.0 / (fan_in + fan_out))
    return jax.random.uniform(
        key, (fan_in, fan_out), minval=-bound, maxval=bound, dtype=jnp.float32
    )


def init_actor_params(key, input_size, hidden_size, output_size):
    k1, k2, k3 = jax.random.split(key, 3)
    return {
        "w1": xavier_uniform(k1, input_size, hidden_size),
        "b1": jnp.zeros((hidden_size,), jnp.float32),
        "w2": xavier_uniform(k2, hidden_size, hidden_size),
        "b2": jnp.zeros((hidden_size,), jnp.float32),
        "w3": xavier_uniform(k3, hidden_size, output_size),
        "b3": jnp.zeros((output_size,), jnp.float32),
    }


def actor_forward_ref(state, params):
    """Pure-JAX reference for correctness check."""
    h1 = jnp.maximum(state @ params["w1"] + params["b1"], 0.0)
    h2 = jnp.maximum(h1 @ params["w2"] + params["b2"], 0.0)
    return jnp.tanh(h2 @ params["w3"] + params["b3"])


if __name__ == "__main__":
    # Shapes implied by the MLP: input_size=16, hidden=32, output=4.
    key = jax.random.PRNGKey(0)
    k_params, k_state = jax.random.split(key)

    input_size, hidden_size, output_size = 16, 32, 4
    batch = 8

    params = init_actor_params(k_params, input_size, hidden_size, output_size)
    state = jax.random.normal(k_state, (batch, input_size), dtype=jnp.float32)

    # f32 MXU-operand path (bit-accurate vs. reference).
    action = actor_forward(state, params)
    action = jax.block_until_ready(action)
    ref = actor_forward_ref(state, params)
    assert action.shape == (batch, output_size)
    assert jnp.allclose(action, ref, atol=1e-5, rtol=1e-5), float(
        jnp.max(jnp.abs(action - ref))
    )

    # bf16 MXU-operand path, multi-step batch grid (2 parallel tiles).
    batch2 = 64
    state2 = jax.random.normal(
        jax.random.PRNGKey(1), (batch2, input_size), dtype=jnp.float32
    )
    action2 = actor_forward(state2, params, batch_tile=32, compute_dtype=jnp.bfloat16)
    action2 = jax.block_until_ready(action2)
    ref2 = actor_forward_ref(state2, params)
    assert action2.shape == (batch2, output_size)
    assert jnp.allclose(action2, ref2, atol=2e-2, rtol=2e-2), float(
        jnp.max(jnp.abs(action2 - ref2))
    )

    print("KERNEL_OK")
</pallas_src>

<mosaic_0001>
module attributes {stable_mosaic.version = 11 : i64} {
  func.func @actor_kernel(%arg0: i32, %arg1: memref<8x128xf32, #tpu.memory_space<vmem>>, %arg2: memref<128x128xf32, #tpu.memory_space<vmem>>, %arg3: memref<1x128xf32, #tpu.memory_space<vmem>>, %arg4: memref<128x128xf32, #tpu.memory_space<vmem>>, %arg5: memref<1x128xf32, #tpu.memory_space<vmem>>, %arg6: memref<128x128xf32, #tpu.memory_space<vmem>>, %arg7: memref<1x128xf32, #tpu.memory_space<vmem>>, %arg8: memref<8x128xf32, #tpu.memory_space<vmem>>) attributes {dimension_semantics = [#tpu.dimension_semantics<parallel>], iteration_bounds = array<i64: 1>, scalar_prefetch = 0 : i64, scratch_operands = 0 : i64, tpu.core_type = #tpu.core_type<tc>, window_params = [{transform_indices = @transform_0, window_bounds = array<i64: 8, 128>}, {pipeline_mode = #tpu.pipeline_mode<synchronous>, transform_indices = @transform_1, window_bounds = array<i64: 128, 128>}, {pipeline_mode = #tpu.pipeline_mode<synchronous>, transform_indices = @transform_2, window_bounds = array<i64: 1, 128>}, {pipeline_mode = #tpu.pipeline_mode<synchronous>, transform_indices = @transform_3, window_bounds = array<i64: 128, 128>}, {pipeline_mode = #tpu.pipeline_mode<synchronous>, transform_indices = @transform_4, window_bounds = array<i64: 1, 128>}, {pipeline_mode = #tpu.pipeline_mode<synchronous>, transform_indices = @transform_5, window_bounds = array<i64: 128, 128>}, {pipeline_mode = #tpu.pipeline_mode<synchronous>, transform_indices = @transform_6, window_bounds = array<i64: 1, 128>}, {transform_indices = @transform_7, window_bounds = array<i64: 8, 128>}]} {
    %c0 = arith.constant 0 : index
    %c0_0 = arith.constant 0 : index
    %0 = vector.load %arg1[%c0, %c0_0] : memref<8x128xf32, #tpu.memory_space<vmem>>, vector<8x128xf32>
    %c0_1 = arith.constant 0 : index
    %c0_2 = arith.constant 0 : index
    %1 = vector.load %arg2[%c0_1, %c0_2] : memref<128x128xf32, #tpu.memory_space<vmem>>, vector<128x128xf32>
    %cst = arith.constant dense<0.000000e+00> : vector<8x128xf32>
    %2 = tpu.matmul %0, %1, %cst {dimension_numbers = #tpu.dot_dimension_numbers<[1], [0], [0], [1], [0, 0, 1, 1], [], []>} : vector<8x128xf32>, vector<128x128xf32>, vector<8x128xf32> -> vector<8x128xf32>
    %c0_3 = arith.constant 0 : index
    %c0_4 = arith.constant 0 : index
    %3 = vector.load %arg3[%c0_3, %c0_4] : memref<1x128xf32, #tpu.memory_space<vmem>>, vector<1x128xf32>
    %4 = vector.broadcast %3 : vector<1x128xf32> to vector<8x128xf32>
    %5 = arith.addf %2, %4 : vector<8x128xf32>
    %cst_5 = arith.constant 0.000000e+00 : f32
    %6 = vector.broadcast %cst_5 : f32 to vector<8x128xf32>
    %7 = arith.maximumf %5, %6 : vector<8x128xf32>
    %c0_6 = arith.constant 0 : index
    %c0_7 = arith.constant 0 : index
    %8 = vector.load %arg4[%c0_6, %c0_7] : memref<128x128xf32, #tpu.memory_space<vmem>>, vector<128x128xf32>
    %cst_8 = arith.constant dense<0.000000e+00> : vector<8x128xf32>
    %9 = tpu.matmul %7, %8, %cst_8 {dimension_numbers = #tpu.dot_dimension_numbers<[1], [0], [0], [1], [0, 0, 1, 1], [], []>} : vector<8x128xf32>, vector<128x128xf32>, vector<8x128xf32> -> vector<8x128xf32>
    %c0_9 = arith.constant 0 : index
    %c0_10 = arith.constant 0 : index
    %10 = vector.load %arg5[%c0_9, %c0_10] : memref<1x128xf32, #tpu.memory_space<vmem>>, vector<1x128xf32>
    %11 = vector.broadcast %10 : vector<1x128xf32> to vector<8x128xf32>
    %12 = arith.addf %9, %11 : vector<8x128xf32>
    %cst_11 = arith.constant 0.000000e+00 : f32
    %13 = vector.broadcast %cst_11 : f32 to vector<8x128xf32>
    %14 = arith.maximumf %12, %13 : vector<8x128xf32>
    %c0_12 = arith.constant 0 : index
    %c0_13 = arith.constant 0 : index
    %15 = vector.load %arg6[%c0_12, %c0_13] : memref<128x128xf32, #tpu.memory_space<vmem>>, vector<128x128xf32>
    %cst_14 = arith.constant dense<0.000000e+00> : vector<8x128xf32>
    %16 = tpu.matmul %14, %15, %cst_14 {dimension_numbers = #tpu.dot_dimension_numbers<[1], [0], [0], [1], [0, 0, 1, 1], [], []>} : vector<8x128xf32>, vector<128x128xf32>, vector<8x128xf32> -> vector<8x128xf32>
    %c0_15 = arith.constant 0 : index
    %c0_16 = arith.constant 0 : index
    %17 = vector.load %arg7[%c0_15, %c0_16] : memref<1x128xf32, #tpu.memory_space<vmem>>, vector<1x128xf32>
    %18 = vector.broadcast %17 : vector<1x128xf32> to vector<8x128xf32>
    %19 = arith.addf %16, %18 : vector<8x128xf32>
    %20 = math.tanh %19 : vector<8x128xf32>
    %c0_17 = arith.constant 0 : index
    %c0_18 = arith.constant 0 : index
    %21 = vector.load %arg8[%c0_17, %c0_18] : memref<8x128xf32, #tpu.memory_space<vmem>>, vector<8x128xf32>
    tpu.vector_store %arg8[%c0_17, %c0_18], %20 {strides = array<i32>} : memref<8x128xf32, #tpu.memory_space<vmem>>, vector<8x128xf32>,
    return
  }
  func.func @transform_0(%arg0: i32) -> (i32, i32) {
    %c0_i32 = arith.constant 0 : i32
    %c0_i32_0 = arith.constant 0 : i32
    return %arg0, %c0_i32 : i32, i32
  }
  func.func @transform_1(%arg0: i32) -> (i32, i32) {
    %c0_i32 = arith.constant 0 : i32
    %c0_i32_0 = arith.constant 0 : i32
    %c0_i32_1 = arith.constant 0 : i32
    return %c0_i32, %c0_i32_0 : i32, i32
  }
  func.func @transform_2(%arg0: i32) -> (i32, i32) {
    %c0_i32 = arith.constant 0 : i32
    %c0_i32_0 = arith.constant 0 : i32
    %c0_i32_1 = arith.constant 0 : i32
    return %c0_i32, %c0_i32_0 : i32, i32
  }
  func.func @transform_3(%arg0: i32) -> (i32, i32) {
    %c0_i32 = arith.constant 0 : i32
    %c0_i32_0 = arith.constant 0 : i32
    %c0_i32_1 = arith.constant 0 : i32
    return %c0_i32, %c0_i32_0 : i32, i32
  }
  func.func @transform_4(%arg0: i32) -> (i32, i32) {
    %c0_i32 = arith.constant 0 : i32
    %c0_i32_0 = arith.constant 0 : i32
    %c0_i32_1 = arith.constant 0 : i32
    return %c0_i32, %c0_i32_0 : i32, i32
  }
  func.func @transform_5(%arg0: i32) -> (i32, i32) {
    %c0_i32 = arith.constant 0 : i32
    %c0_i32_0 = arith.constant 0 : i32
    %c0_i32_1 = arith.constant 0 : i32
    return %c0_i32, %c0_i32_0 : i32, i32
  }
  func.func @transform_6(%arg0: i32) -> (i32, i32) {
    %c0_i32 = arith.constant 0 : i32
    %c0_i32_0 = arith.constant 0 : i32
    %c0_i32_1 = arith.constant 0 : i32
    return %c0_i32, %c0_i32_0 : i32, i32
  }
  func.func @transform_7(%arg0: i32) -> (i32, i32) {
    %c0_i32 = arith.constant 0 : i32
    %c0_i32_0 = arith.constant 0 : i32
    return %arg0, %c0_i32 : i32, i32
  }
}

</mosaic_0001>

<bundles_post_ra>
// kernel: actor_forward.1
= control target key start
LH: loop header
LB: loop body
LE: loop exit
PB: predicated region body
PF: predicated region fallthrough
CT: control target
= control target key end

     0   :  { %v550_v0 = vmov 0.0|0.0   ;;  %vm551_vm0 = vmmov 0   ;;  %v552_v4 = vmov 0.0   ;;  %s782_s1 = inlined_call_operand.vmem [shape: f32[128,128], index: 1, kind: input, shape index: {}]   ;;  %s783_s3 = inlined_call_operand.vmem [shape: f32[128,128], index: 3, kind: input, shape index: {}]   ;;  %s784_s0 = inlined_call_operand.vmem [shape: f32[8,128], index: 0, kind: input, shape index: {}]   ;;  %s785_s5 = inlined_call_operand.vmem [shape: f32[128,128], index: 5, kind: input, shape index: {}]   ;;  %s786_s2 = inlined_call_operand.vmem [shape: f32[1,128], index: 2, kind: input, shape index: {}]   ;;  %s787_s4 = inlined_call_operand.vmem [shape: f32[1,128], index: 4, kind: input, shape index: {}]   ;;  %s788_s6 = inlined_call_operand.vmem [shape: f32[1,128], index: 6, kind: input, shape index: {}]   ;;  %s789_s7 = inlined_call_operand.vmem [shape: f32[8,128], index: 7, kind: output, shape index: {}]  }
   0x1   :  { %473 = vmatprep.subr.bf16.mxu0 %v550_v0  ;;  %v27_v1 = vld [vmem:[%s782_s1] sm:$0xff]  ;;  %v28_v2 = vld [vmem:[%s782_s1 + $0x8] sm:$0xff]  ;;  %v29_v3 = vld [vmem:[%s782_s1 + $0x10] sm:$0xff]  ;;  %400 = vmatprep.mubr.msk.f32.mxu0 %vm551_vm0, %v552_v4 }
   0x2   :  { %v474_v5 = vpack.c.bf16 %v28_v2, %v27_v1  ;;  %v30_v6 = vld [vmem:[%s782_s1 + $0x18] sm:$0xff]  ;;  %497 = vmatprep.subr.bf16.mxu1 %v550_v0  ;;  %435 = vmatprep.mubr.msk.f32.mxu1 %vm551_vm0, %v552_v4  ;;  %v31_v8 = vld [vmem:[%s782_s1 + $0x20] sm:$0xff]  ;;  %v32_v9 = vld [vmem:[%s782_s1 + $0x28] sm:$0xff] }
   0x3   :  { %v477_v7 = vpack.c.bf16 %v30_v6, %v29_v3  ;;  %v121_v10 = vld [vmem:[%s783_s3] sm:$0xff]  ;;  %v122_v11 = vld [vmem:[%s783_s3 + $0x8] sm:$0xff]  ;;  %v123_v12 = vld [vmem:[%s783_s3 + $0x10] sm:$0xff]  ;;  %v480_v14 = vpack.c.bf16 %v32_v9, %v31_v8 }
   0x4   :  { %475 = vmatpush3.bf16.msra.mxu0 %v474_v5  ;;  %v124_v13 = vld [vmem:[%s783_s3 + $0x18] sm:$0xff]  ;;  %v498_v15 = vpack.c.bf16 %v122_v11, %v121_v10  ;;  %v33_v16 = vld [vmem:[%s782_s1 + $0x30] sm:$0xff]  ;;  %v125_v19 = vld [vmem:[%s783_s3 + $0x20] sm:$0xff] }
   0x5   :  { %476 = vmatprep.subr.bf16.mxu0 %v550_v0  ;;  %v34_v17 = vld [vmem:[%s782_s1 + $0x38] sm:$0xff]  ;;  %v501_v18 = vpack.c.bf16 %v124_v13, %v123_v12  ;;  %v126_v20 = vld [vmem:[%s783_s3 + $0x28] sm:$0xff]  ;;  %v35_v22 = vld [vmem:[%s782_s1 + $0x40] sm:$0xff] }
   0x6   :  { %499 = vmatpush3.bf16.msra.mxu1 %v498_v15  ;;  %v483_v21 = vpack.c.bf16 %v34_v17, %v33_v16  ;;  %v36_v23 = vld [vmem:[%s782_s1 + $0x48] sm:$0xff]  ;;  %v504_v24 = vpack.c.bf16 %v126_v20, %v125_v19  ;;  %v127_v25 = vld [vmem:[%s783_s3 + $0x30] sm:$0xff]  ;;  %v128_v26 = vld [vmem:[%s783_s3 + $0x38] sm:$0xff] }
   0x7   :  { %500 = vmatprep.subr.bf16.mxu1 %v550_v0  ;;  %v486_v27 = vpack.c.bf16 %v36_v23, %v35_v22  ;;  %v37_v28 = vld [vmem:[%s782_s1 + $0x50] sm:$0xff]  ;;  %v38_v29 = vld [vmem:[%s782_s1 + $0x58] sm:$0xff]  ;;  %v507_v30 = vpack.c.bf16 %v128_v26, %v127_v25  ;;  %v129_v31 = vld [vmem:[%s783_s3 + $0x40] sm:$0xff] }
   0x8   :  { %478 = vmatpush3.bf16.msra.mxu0 %v477_v7  ;;  %v130_v32 = vld [vmem:[%s783_s3 + $0x48] sm:$0xff]  ;;  %v489_v33 = vpack.c.bf16 %v38_v29, %v37_v28  ;;  %v39_v34 = vld [vmem:[%s782_s1 + $0x60] sm:$0xff]  ;;  %v131_v37 = vld [vmem:[%s783_s3 + $0x50] sm:$0xff] }
   0x9   :  { %479 = vmatprep.subr.bf16.mxu0 %v550_v0  ;;  %v40_v35 = vld [vmem:[%s782_s1 + $0x68] sm:$0xff]  ;;  %v510_v36 = vpack.c.bf16 %v130_v32, %v129_v31  ;;  %v132_v38 = vld [vmem:[%s783_s3 + $0x58] sm:$0xff]  ;;  %v41_v40 = vld [vmem:[%s782_s1 + $0x70] sm:$0xff] }
   0xa   :  { %502 = vmatpush3.bf16.msra.mxu1 %v501_v18  ;;  %v492_v39 = vpack.c.bf16 %v40_v35, %v39_v34  ;;  %v42_v41 = vld [vmem:[%s782_s1 + $0x78] sm:$0xff]  ;;  %v513_v42 = vpack.c.bf16 %v132_v38, %v131_v37  ;;  %v133_v43 = vld [vmem:[%s783_s3 + $0x60] sm:$0xff]  ;;  %v134_v44 = vld [vmem:[%s783_s3 + $0x68] sm:$0xff] }
   0xb   :  { %503 = vmatprep.subr.bf16.mxu1 %v550_v0  ;;  %v495_v45 = vpack.c.bf16 %v42_v41, %v41_v40  ;;  %v516_v46 = vpack.c.bf16 %v134_v44, %v133_v43  ;;  %v26_v47 = vld [vmem:[%s784_s0] sm:$0xff]  ;;  %v135_v48 = vld [vmem:[%s783_s3 + $0x70] sm:$0xff]  ;;  %v136_v49 = vld [vmem:[%s783_s3 + $0x78] sm:$0xff] }
   0xc   :  { %481 = vmatpush3.bf16.msra.mxu0 %v480_v14  ;;  %v519_v50 = vpack.c.bf16 %v136_v49, %v135_v48  ;;  %v215_v51 = vld [vmem:[%s785_s5] sm:$0xff]  ;;  %v216_v52 = vld [vmem:[%s785_s5 + $0x8] sm:$0xff]  ;;  %v217_v53 = vld [vmem:[%s785_s5 + $0x10] sm:$0xff] }
   0xd   :  { %482 = vmatprep.subr.bf16.mxu0 %v550_v0  ;;  %v522_v54 = vpack.c.bf16 %v216_v52, %v215_v51  ;;  %v218_v55 = vld [vmem:[%s785_s5 + $0x18] sm:$0xff]  ;;  %v219_v57 = vld [vmem:[%s785_s5 + $0x20] sm:$0xff]  ;;  %v220_v58 = vld [vmem:[%s785_s5 + $0x28] sm:$0xff] }
   0xe   :  { %505 = vmatpush3.bf16.msra.mxu1 %v504_v24  ;;  %v525_v56 = vpack.c.bf16 %v218_v55, %v217_v53  ;;  %v528_v59 = vpack.c.bf16 %v220_v58, %v219_v57  ;;  %v221_v60 = vld [vmem:[%s785_s5 + $0x30] sm:$0xff]  ;;  %v222_v61 = vld [vmem:[%s785_s5 + $0x38] sm:$0xff]  ;;  %v223_v63 = vld [vmem:[%s785_s5 + $0x40] sm:$0xff] }
   0xf   :  { %506 = vmatprep.subr.bf16.mxu1 %v550_v0  ;;  %v531_v62 = vpack.c.bf16 %v222_v61, %v221_v60  ;;  %v224_v1 = vld [vmem:[%s785_s5 + $0x48] sm:$0xff]  ;;  %v225_v3 = vld [vmem:[%s785_s5 + $0x50] sm:$0xff]  ;;  %v227_v6 = vld [vmem:[%s785_s5 + $0x60] sm:$0xff] }
  0x10   :  { %484 = vmatpush3.bf16.msra.mxu0 %v483_v21  ;;  %v534_v2 = vpack.c.bf16 %v224_v1, %v223_v63  ;;  %v228_v7 = vld [vmem:[%s785_s5 + $0x68] sm:$0xff]  ;;  %v314_v9 = vld [vmem:[%s786_s2] ss:$0 sm:$0xff]  ;;  %v229_v14 = vld [vmem:[%s785_s5 + $0x70] sm:$0xff] }
  0x11   :  { %485 = vmatprep.subr.bf16.mxu0 %v550_v0  ;;  %v540_v8 = vpack.c.bf16 %v228_v7, %v227_v6  ;;  %v230_v15 = vld [vmem:[%s785_s5 + $0x78] sm:$0xff]  ;;  %v316_v21 = vld [vmem:[%s788_s6] ss:$0 sm:$0xff] }
  0x12   :  { %508 = vmatpush3.bf16.msra.mxu1 %v507_v30  ;;  %v543_v16 = vpack.c.bf16 %v230_v15, %v229_v14 }
  0x13   :  { %509 = vmatprep.subr.bf16.mxu1 %v550_v0 }
  0x14   :  { %487 = vmatpush3.bf16.msra.mxu0 %v486_v27 }
  0x15   :  { %488 = vmatprep.subr.bf16.mxu0 %v550_v0 }
  0x16   :  { %511 = vmatpush3.bf16.msra.mxu1 %v510_v36 }
  0x17   :  { %512 = vmatprep.subr.bf16.mxu1 %v550_v0 }
  0x18   :  { %490 = vmatpush3.bf16.msra.mxu0 %v489_v33 }
  0x19   :  { %491 = vmatprep.subr.bf16.mxu0 %v550_v0 }
  0x1a   :  { %514 = vmatpush3.bf16.msra.mxu1 %v513_v42 }
  0x1b   :  { %515 = vmatprep.subr.bf16.mxu1 %v550_v0 }
  0x1c   :  { %493 = vmatpush3.bf16.msra.mxu0 %v492_v39 }
  0x1d   :  { %494 = vmatprep.subr.bf16.mxu0 %v550_v0 }
  0x1e   :  { %517 = vmatpush3.bf16.msra.mxu1 %v516_v46 }
  0x1f   :  { %518 = vmatprep.subr.bf16.mxu1 %v550_v0 }
  0x20   :  { %496 = vmatpush3.bf16.msra.mxu0 %v495_v45 }
  0x21   :  { %521 = vmatprep.subr.bf16.mxu0 %v550_v0 }
  0x22   :  { %520 = vmatpush3.bf16.msra.mxu1 %v519_v50 }
  0x23   :  { %401 = vmatmul.mubr.f32.vlgmr.msra.gmra.mrb[0].mxu0 %v26_v47 }
  0x24   :  { %470 = vmatprep.mubr.msk.f32.mxu0 %vm551_vm0, %v552_v4  ;;  %523 = vmatpush3.bf16.msra.mxu0 %v522_v54  ;;  %v226_v4 = vld [vmem:[%s785_s5 + $0x58] sm:$0xff] }
  0x25   :  { %524 = vmatprep.subr.bf16.mxu0 %v550_v0  ;;  %v537_v5 = vpack.c.bf16 %v226_v4, %v225_v3 }
  0x28   :  { %526 = vmatpush3.bf16.msra.mxu0 %v525_v56 }
  0x29   :  { %527 = vmatprep.subr.bf16.mxu0 %v550_v0 }
  0x2c   :  { %529 = vmatpush3.bf16.msra.mxu0 %v528_v59 }
  0x2d   :  { %530 = vmatprep.subr.bf16.mxu0 %v550_v0 }
  0x30   :  { %532 = vmatpush3.bf16.msra.mxu0 %v531_v62 }
  0x31   :  { %533 = vmatprep.subr.bf16.mxu0 %v550_v0 }
  0x34   :  { %535 = vmatpush3.bf16.msra.mxu0 %v534_v2 }
  0x35   :  { %536 = vmatprep.subr.bf16.mxu0 %v550_v0 }
  0x38   :  { %538 = vmatpush3.bf16.msra.mxu0 %v537_v5 }
  0x39   :  { %539 = vmatprep.subr.bf16.mxu0 %v550_v0 }
  0x3c   :  { %541 = vmatpush3.bf16.msra.mxu0 %v540_v8 }
  0x3d   :  { %542 = vmatprep.subr.bf16.mxu0 %v550_v0  ;;  %v315_v0 = vld [vmem:[%s787_s4] ss:$0 sm:$0xff] }
  0x40   :  { %544 = vmatpush3.bf16.msra.mxu0 %v543_v16 }
  0xf6   :  { %v116_v10 = vpop.f32.mrb[0].mxu0 }
  0xf7   :  { %v117_v11 = vadd.f32 %v314_v9, %v116_v10  ;;  %v402_v12 = vpop.f32.mrb[1].mxu0 }
  0xf9   :  { %v120_v13 = vmax.f32 %v117_v11, 0.0 }
  0xfb   :  { %436 = vmatmul.mubr.f32.vlgmr.msra.gmra.mrb[0].mxu1 %v120_v13 }
 0x1ce   :  { %v210_v17 = vpop.f32.mrb[0].mxu1 }
 0x1cf   :  { %v211_v18 = vadd.f32 %v315_v0, %v210_v17  ;;  %v437_v19 = vpop.f32.mrb[1].mxu1 }
 0x1d1   :  { %v214_v20 = vmax.f32 %v211_v18, 0.0 }
 0x1d3   :  { %471 = vmatmul.mubr.f32.vlgmr.msra.gmra.mrb[2].mxu0 %v214_v20 }
 0x2a6   :  { %v304_v22 = vpop.f32.mrb[2].mxu0 }
 0x2a7   :  { %v305_v23 = vadd.f32 %v316_v21, %v304_v22  ;;  %v472_v24 = vpop.f32.mrb[3].mxu0 }
 0x2a9   :  { %548 = vtanh.f32 %v305_v23 }
 0x2b3   :  { %v549_v25 = vpop.eup %548 }
 0x2b4   :  { %309 = vst [vmem:[%s789_s7] sm:$0xff] %v549_v25 }

</bundles_post_ra>
